<compile_context>
chip_gen: v7x
topology: tpu7x:2x2x1
jax: 0.10.0
libtpu: 0.0.40
codegen_flags: <defaults>
</compile_context>

<pallas_src>
import functools

import jax
import jax.numpy as jnp
from jax.experimental import pallas as pl
from jax.experimental.pallas import tpu as pltpu


def _round_up(n, m):
    return ((n + m - 1) // m) * m


def _pad2d(a, rows, cols):
    return jnp.pad(a, ((0, rows - a.shape[0]), (0, cols - a.shape[1])))


def mlp_kernel(x_ref, w1_ref, b1_ref, w2_ref, b2_ref, w3_ref, b3_ref,
               out_ref, h2_ref):
    # x tile arrives f32; cast to bf16 in-kernel (VPU work that hides under the
    # x DMA) so the wrapper never writes a padded bf16 copy of x back to HBM.
    x = x_ref[...].astype(jnp.bfloat16)

    # fc1 + ReLU (dropout == identity in eval mode)
    h1 = jnp.dot(x, w1_ref[...], preferred_element_type=jnp.float32)
    h1 = jnp.maximum(h1 + b1_ref[...], 0.0)                  # (TB, 256) f32

    # fc2 + ReLU (dropout == identity in eval mode)
    h2 = jnp.dot(h1.astype(jnp.bfloat16), w2_ref[...],
                 preferred_element_type=jnp.float32)
    h2 = jnp.maximum(h2 + b2_ref[...], 0.0)                   # (TB, 128) f32
    h2_ref[...] = h2

    # output fc (no activation)
    out = jnp.dot(h2.astype(jnp.bfloat16), w3_ref[...],
                  preferred_element_type=jnp.float32)
    out_ref[...] = out + b3_ref[...]                          # (TB, out_pad) f32


def _choose_batch_tiling(B, d_pad, tb_max=1024):
    """Pick (tile_rows, n_grid_steps) for the batch axis."""
    # Keep the double-buffered f32 x tile under ~16 MiB of the 32 MiB scoped
    # VMEM budget (leaves room for resident weights + double-buffered outputs).
    tb_cap = max(64, ((16 * 1024 * 1024) // (2 * 4 * d_pad)) // 16 * 16)
    tb_max = min(tb_max, tb_cap)

    n_steps = pl.cdiv(B, tb_max)
    if n_steps == 1 and B > 16:
        # v7x has 2 TensorCores: give the "parallel" batch axis >= 2 steps.
        n_steps = 2
    elif n_steps > 1 and n_steps % 2:
        # keep the step count even so the two cores stay balanced.
        n_steps += 1
    tb = _round_up(pl.cdiv(B, n_steps), 16)   # 16-row multiple (bf16 sublanes)
    return tb, n_steps


def prepare_params(params):
    """Pad feature dims to lane multiples of 128 and cast weights to bf16.

    Hoisted out of the per-forward jitted path: call once at model load time.
    """
    w1, b1, w2, b2, w3, b3 = params
    input_dim, h1_dim = w1.shape
    h2_dim = w2.shape[1]
    out_dim = w3.shape[1]

    d_pad = _round_up(input_dim, 128)
    h1_pad = _round_up(h1_dim, 128)     # 250 -> 256
    h2_pad = _round_up(h2_dim, 128)     # 100 -> 128
    out_pad = _round_up(out_dim, 128)   # 10  -> 128

    padded = (
        _pad2d(w1, d_pad, h1_pad).astype(jnp.bfloat16),
        _pad2d(b1.reshape(1, -1), 1, h1_pad).astype(jnp.float32),
        _pad2d(w2, h1_pad, h2_pad).astype(jnp.bfloat16),
        _pad2d(b2.reshape(1, -1), 1, h2_pad).astype(jnp.float32),
        _pad2d(w3, h2_pad, out_pad).astype(jnp.bfloat16),
        _pad2d(b3.reshape(1, -1), 1, out_pad).astype(jnp.float32),
    )
    dims = {"input_dim": input_dim, "hidden_dim": h2_dim, "output_dim": out_dim}
    return padded, dims


@functools.partial(jax.jit, static_argnames=("hidden_dim", "output_dim"))
def mlp_forward(x, padded_params, hidden_dim, output_dim):
    """x: (B, ...) float. padded_params from prepare_params().

    Returns (outputs, hidden) like the torch module (f32, unpadded)."""
    w1p, b1p, w2p, b2p, w3p, b3p = padded_params
    B = x.shape[0]
    x2d = x.reshape(B, -1).astype(jnp.float32)
    input_dim = x2d.shape[1]

    d_pad, h1_pad = w1p.shape
    h2_pad = w2p.shape[1]
    out_pad = w3p.shape[1]
    assert d_pad == _round_up(input_dim, 128), "params/input shape mismatch"

    tb, n_steps = _choose_batch_tiling(B, d_pad)
    b_pad = tb * n_steps

    # Only touch x if padding is actually needed (no-op for aligned shapes,
    # e.g. input_dim=1024 already a 128-multiple).
    if (b_pad, d_pad) != (B, input_dim):
        x2d = jnp.pad(x2d, ((0, b_pad - B), (0, d_pad - input_dim)))

    resident = lambda i: (0, 0)         # weights/biases: same block every step
    batched = lambda i: (i, 0)          # x / outputs: blocked on the batch axis

    grid_spec = pltpu.PrefetchScalarGridSpec(
        num_scalar_prefetch=0,
        grid=(n_steps,),
        in_specs=[
            pl.BlockSpec((tb, d_pad), batched),         # x (f32, cast in-kernel)
            pl.BlockSpec((d_pad, h1_pad), resident),    # w1 (bf16)
            pl.BlockSpec((1, h1_pad), resident),        # b1 (f32)
            pl.BlockSpec((h1_pad, h2_pad), resident),   # w2
            pl.BlockSpec((1, h2_pad), resident),        # b2
            pl.BlockSpec((h2_pad, out_pad), resident),  # w3
            pl.BlockSpec((1, out_pad), resident),       # b3
        ],
        out_specs=(
            pl.BlockSpec((tb, out_pad), batched),       # outputs (padded)
            pl.BlockSpec((tb, h2_pad), batched),        # hidden h2 (padded)
        ),
    )

    flops = 2 * b_pad * (d_pad * h1_pad + h1_pad * h2_pad + h2_pad * out_pad)
    bytes_accessed = (
        b_pad * d_pad * 4                                 # x (f32 read)
        + (w1p.size + w2p.size + w3p.size) * 2            # bf16 weights
        + (b1p.size + b2p.size + b3p.size) * 4            # f32 biases
        + b_pad * (out_pad + h2_pad) * 4                  # f32 outputs
    )

    fn = pl.pallas_call(
        mlp_kernel,
        out_shape=(
            jax.ShapeDtypeStruct((b_pad, out_pad), jnp.float32),
            jax.ShapeDtypeStruct((b_pad, h2_pad), jnp.float32),
        ),
        grid_spec=grid_spec,
        compiler_params=pltpu.CompilerParams(
            dimension_semantics=("parallel",),
            vmem_limit_bytes=32 * 1024 * 1024,
        ),
        cost_estimate=pl.CostEstimate(
            flops=flops, transcendentals=0, bytes_accessed=bytes_accessed),
    )
    out_p, h2_p = fn(x2d, w1p, b1p, w2p, b2p, w3p, b3p)

    # slice padded lanes / rows back off
    return out_p[:B, :output_dim], h2_p[:B, :hidden_dim]


def init_params(key, input_dim, output_dim):
    """Deterministic parameter init (PyTorch-Linear-style uniform bounds)."""
    def linear(key, fan_in, fan_out):
        k_w, k_b = jax.random.split(key)
        bound = 1.0 / jnp.sqrt(fan_in)
        w = jax.random.uniform(k_w, (fan_in, fan_out), jnp.float32, -bound, bound)
        b = jax.random.uniform(k_b, (1, fan_out), jnp.float32, -bound, bound)
        return w, b

    k1, k2, k3 = jax.random.split(key, 3)
    w1, b1 = linear(k1, input_dim, 250)   # input_fc
    w2, b2 = linear(k2, 250, 100)         # hidden_fc
    w3, b3 = linear(k3, 100, output_dim)  # output_fc
    return (w1, b1, w2, b2, w3, b3)


if __name__ == "__main__":
    key = jax.random.PRNGKey(0)
    k_x, k_p = jax.random.split(key)

    B, C, H, W = 2, 4, 16, 16            # input_dim = 4*16*16 = 1024
    output_dim = 10
    x = jax.random.normal(k_x, (B, C, H, W), jnp.float32)
    params = init_params(k_p, C * H * W, output_dim)

    # pad/cast weights once (hoisted out of the per-call path)
    padded_params, dims = prepare_params(params)

    outputs, hidden = mlp_forward(x, padded_params,
                                  hidden_dim=dims["hidden_dim"],
                                  output_dim=dims["output_dim"])
    jax.block_until_ready((outputs, hidden))
    assert outputs.shape == (B, output_dim) and hidden.shape == (B, 100)

    # --- reference that mirrors the kernel's bf16-input / f32-accum math ---
    x2d = x.reshape(B, -1)
    w1, b1, w2, b2, w3, b3 = params
    xb = x2d.astype(jnp.bfloat16)
    h1_m = jnp.maximum(
        jnp.dot(xb, w1.astype(jnp.bfloat16),
                preferred_element_type=jnp.float32) + b1, 0.0)
    h2_m = jnp.maximum(
        jnp.dot(h1_m.astype(jnp.bfloat16), w2.astype(jnp.bfloat16),
                preferred_element_type=jnp.float32) + b2, 0.0)
    out_m = jnp.dot(h2_m.astype(jnp.bfloat16), w3.astype(jnp.bfloat16),
                    preferred_element_type=jnp.float32) + b3
    assert jnp.allclose(outputs, out_m, atol=1e-3, rtol=1e-3)
    assert jnp.allclose(hidden, h2_m, atol=1e-3, rtol=1e-3)

    # --- loose check vs the pure-f32 torch-style reference ------------------
    h1_f = jnp.maximum(x2d @ w1 + b1, 0.0)
    h2_f = jnp.maximum(h1_f @ w2 + b2, 0.0)
    out_f = h2_f @ w3 + b3
    assert jnp.allclose(outputs, out_f, atol=5e-2, rtol=5e-2)
    assert jnp.allclose(hidden, h2_f, atol=5e-2, rtol=5e-2)

    print("KERNEL_OK")
</pallas_src>

<mosaic_0001>
module attributes {stable_mosaic.version = 11 : i64} {
  func.func @mlp_kernel(%arg0: i32, %arg1: memref<16x1024xf32, #tpu.memory_space<vmem>>, %arg2: memref<1024x256xbf16, #tpu.memory_space<vmem>>, %arg3: memref<1x256xf32, #tpu.memory_space<vmem>>, %arg4: memref<256x128xbf16, #tpu.memory_space<vmem>>, %arg5: memref<1x128xf32, #tpu.memory_space<vmem>>, %arg6: memref<128x128xbf16, #tpu.memory_space<vmem>>, %arg7: memref<1x128xf32, #tpu.memory_space<vmem>>, %arg8: memref<16x128xf32, #tpu.memory_space<vmem>>, %arg9: memref<16x128xf32, #tpu.memory_space<vmem>>) attributes {dimension_semantics = [#tpu.dimension_semantics<parallel>], iteration_bounds = array<i64: 1>, scalar_prefetch = 0 : i64, scratch_operands = 0 : i64, tpu.core_type = #tpu.core_type<tc>, window_params = [{transform_indices = @transform_0, window_bounds = array<i64: 16, 1024>}, {pipeline_mode = #tpu.pipeline_mode<synchronous>, transform_indices = @transform_1, window_bounds = array<i64: 1024, 256>}, {pipeline_mode = #tpu.pipeline_mode<synchronous>, transform_indices = @transform_2, window_bounds = array<i64: 1, 256>}, {pipeline_mode = #tpu.pipeline_mode<synchronous>, transform_indices = @transform_3, window_bounds = array<i64: 256, 128>}, {pipeline_mode = #tpu.pipeline_mode<synchronous>, transform_indices = @transform_4, window_bounds = array<i64: 1, 128>}, {pipeline_mode = #tpu.pipeline_mode<synchronous>, transform_indices = @transform_5, window_bounds = array<i64: 128, 128>}, {pipeline_mode = #tpu.pipeline_mode<synchronous>, transform_indices = @transform_6, window_bounds = array<i64: 1, 128>}, {transform_indices = @transform_7, window_bounds = array<i64: 16, 128>}, {transform_indices = @transform_8, window_bounds = array<i64: 16, 128>}]} {
    %c0 = arith.constant 0 : index
    %c0_0 = arith.constant 0 : index
    %0 = vector.load %arg1[%c0, %c0_0] : memref<16x1024xf32, #tpu.memory_space<vmem>>, vector<16x1024xf32>
    %1 = arith.truncf %0 : vector<16x1024xf32> to vector<16x1024xbf16>
    %c0_1 = arith.constant 0 : index
    %c0_2 = arith.constant 0 : index
    %2 = vector.load %arg2[%c0_1, %c0_2] : memref<1024x256xbf16, #tpu.memory_space<vmem>>, vector<1024x256xbf16>
    %cst = arith.constant dense<0.000000e+00> : vector<16x256xf32>
    %3 = tpu.matmul %1, %2, %cst {dimension_numbers = #tpu.dot_dimension_numbers<[1], [0], [0], [1], [0, 0, 1, 1], [], []>} : vector<16x1024xbf16>, vector<1024x256xbf16>, vector<16x256xf32> -> vector<16x256xf32>
    %c0_3 = arith.constant 0 : index
    %c0_4 = arith.constant 0 : index
    %4 = vector.load %arg3[%c0_3, %c0_4] : memref<1x256xf32, #tpu.memory_space<vmem>>, vector<1x256xf32>
    %5 = vector.broadcast %4 : vector<1x256xf32> to vector<16x256xf32>
    %6 = arith.addf %3, %5 : vector<16x256xf32>
    %cst_5 = arith.constant 0.000000e+00 : f32
    %7 = vector.broadcast %cst_5 : f32 to vector<16x256xf32>
    %8 = arith.maximumf %6, %7 : vector<16x256xf32>
    %9 = arith.truncf %8 : vector<16x256xf32> to vector<16x256xbf16>
    %c0_6 = arith.constant 0 : index
    %c0_7 = arith.constant 0 : index
    %10 = vector.load %arg4[%c0_6, %c0_7] : memref<256x128xbf16, #tpu.memory_space<vmem>>, vector<256x128xbf16>
    %cst_8 = arith.constant dense<0.000000e+00> : vector<16x128xf32>
    %11 = tpu.matmul %9, %10, %cst_8 {dimension_numbers = #tpu.dot_dimension_numbers<[1], [0], [0], [1], [0, 0, 1, 1], [], []>} : vector<16x256xbf16>, vector<256x128xbf16>, vector<16x128xf32> -> vector<16x128xf32>
    %c0_9 = arith.constant 0 : index
    %c0_10 = arith.constant 0 : index
    %12 = vector.load %arg5[%c0_9, %c0_10] : memref<1x128xf32, #tpu.memory_space<vmem>>, vector<1x128xf32>
    %13 = vector.broadcast %12 : vector<1x128xf32> to vector<16x128xf32>
    %14 = arith.addf %11, %13 : vector<16x128xf32>
    %cst_11 = arith.constant 0.000000e+00 : f32
    %15 = vector.broadcast %cst_11 : f32 to vector<16x128xf32>
    %16 = arith.maximumf %14, %15 : vector<16x128xf32>
    %c0_12 = arith.constant 0 : index
    %c0_13 = arith.constant 0 : index
    %17 = vector.load %arg9[%c0_12, %c0_13] : memref<16x128xf32, #tpu.memory_space<vmem>>, vector<16x128xf32>
    tpu.vector_store %arg9[%c0_12, %c0_13], %16 {strides = array<i32>} : memref<16x128xf32, #tpu.memory_space<vmem>>, vector<16x128xf32>,
    %18 = arith.truncf %16 : vector<16x128xf32> to vector<16x128xbf16>
    %c0_14 = arith.constant 0 : index
    %c0_15 = arith.constant 0 : index
    %19 = vector.load %arg6[%c0_14, %c0_15] : memref<128x128xbf16, #tpu.memory_space<vmem>>, vector<128x128xbf16>
    %cst_16 = arith.constant dense<0.000000e+00> : vector<16x128xf32>
    %20 = tpu.matmul %18, %19, %cst_16 {dimension_numbers = #tpu.dot_dimension_numbers<[1], [0], [0], [1], [0, 0, 1, 1], [], []>} : vector<16x128xbf16>, vector<128x128xbf16>, vector<16x128xf32> -> vector<16x128xf32>
    %c0_17 = arith.constant 0 : index
    %c0_18 = arith.constant 0 : index
    %21 = vector.load %arg7[%c0_17, %c0_18] : memref<1x128xf32, #tpu.memory_space<vmem>>, vector<1x128xf32>
    %22 = vector.broadcast %21 : vector<1x128xf32> to vector<16x128xf32>
    %23 = arith.addf %20, %22 : vector<16x128xf32>
    %c0_19 = arith.constant 0 : index
    %c0_20 = arith.constant 0 : index
    %24 = vector.load %arg8[%c0_19, %c0_20] : memref<16x128xf32, #tpu.memory_space<vmem>>, vector<16x128xf32>
    tpu.vector_store %arg8[%c0_19, %c0_20], %23 {strides = array<i32>} : memref<16x128xf32, #tpu.memory_space<vmem>>, vector<16x128xf32>,
    return
  }
  func.func @transform_0(%arg0: i32) -> (i32, i32) {
    %c0_i32 = arith.constant 0 : i32
    %c0_i32_0 = arith.constant 0 : i32
    return %arg0, %c0_i32 : i32, i32
  }
  func.func @transform_1(%arg0: i32) -> (i32, i32) {
    %c0_i32 = arith.constant 0 : i32
    %c0_i32_0 = arith.constant 0 : i32
    %c0_i32_1 = arith.constant 0 : i32
    return %c0_i32, %c0_i32_0 : i32, i32
  }
  func.func @transform_2(%arg0: i32) -> (i32, i32) {
    %c0_i32 = arith.constant 0 : i32
    %c0_i32_0 = arith.constant 0 : i32
    %c0_i32_1 = arith.constant 0 : i32
    return %c0_i32, %c0_i32_0 : i32, i32
  }
  func.func @transform_3(%arg0: i32) -> (i32, i32) {
    %c0_i32 = arith.constant 0 : i32
    %c0_i32_0 = arith.constant 0 : i32
    %c0_i32_1 = arith.constant 0 : i32
    return %c0_i32, %c0_i32_0 : i32, i32
  }
  func.func @transform_4(%arg0: i32) -> (i32, i32) {
    %c0_i32 = arith.constant 0 : i32
    %c0_i32_0 = arith.constant 0 : i32
    %c0_i32_1 = arith.constant 0 : i32
    return %c0_i32, %c0_i32_0 : i32, i32
  }
  func.func @transform_5(%arg0: i32) -> (i32, i32) {
    %c0_i32 = arith.constant 0 : i32
    %c0_i32_0 = arith.constant 0 : i32
    %c0_i32_1 = arith.constant 0 : i32
    return %c0_i32, %c0_i32_0 : i32, i32
  }
  func.func @transform_6(%arg0: i32) -> (i32, i32) {
    %c0_i32 = arith.constant 0 : i32
    %c0_i32_0 = arith.constant 0 : i32
    %c0_i32_1 = arith.constant 0 : i32
    return %c0_i32, %c0_i32_0 : i32, i32
  }
  func.func @transform_7(%arg0: i32) -> (i32, i32) {
    %c0_i32 = arith.constant 0 : i32
    %c0_i32_0 = arith.constant 0 : i32
    return %arg0, %c0_i32 : i32, i32
  }
  func.func @transform_8(%arg0: i32) -> (i32, i32) {
    %c0_i32 = arith.constant 0 : i32
    %c0_i32_0 = arith.constant 0 : i32
    return %arg0, %c0_i32 : i32, i32
  }
}

</mosaic_0001>

<bundles_post_ra>
// kernel: mlp_forward.1
= control target key start
LH: loop header
LB: loop body
LE: loop exit
PB: predicated region body
PF: predicated region fallthrough
CT: control target
= control target key end

     0   :  { %14 = vsyncpa [#allocation3], 0  ;;  %s1795_s27 = smov [#allocation2]   ;;  %s1998_s0 = inlined_call_operand.vmem [shape: f32[16,1024], index: 0, kind: input, shape index: {}]   ;;  %s1999_s1 = inlined_call_operand.hbm [shape: bf16[1024,256], index: 1, kind: input, shape index: {}]   ;;  %s2000_s2 = inlined_call_operand.vmem [shape: f32[1,256], index: 2, kind: input, shape index: {}]   ;;  %s2001_s3 = inlined_call_operand.vmem [shape: bf16[256,128], index: 3, kind: input, shape index: {}]   ;;  %s2002_s4 = inlined_call_operand.vmem [shape: f32[1,128], index: 4, kind: input, shape index: {}]   ;;  %s2003_s5 = inlined_call_operand.vmem [shape: bf16[128,128], index: 5, kind: input, shape index: {}]   ;;  %s2004_s6 = inlined_call_operand.vmem [shape: f32[1,128], index: 6, kind: input, shape index: {}]   ;;  %s2005_s7 = inlined_call_operand.vmem [shape: f32[16,128], index: 7, kind: output, shape index: {0}]   ;;  %s2006_s8 = inlined_call_operand.vmem [shape: f32[16,128], index: 8, kind: output, shape index: {1}]  }
   0x1   :  { %s22_s28 = sshll.u32 %s1795_s27, 4  ;;  %s1771_s9 = scalar_lea.hbm %s1999_s1, 16384  ;;  %s23_s28 = int_to_ptr.vmem [resolvable:$true] %s22_s28 }
   0x2   :  { %p1772_p0 = scmp.ne.s32.totalorder %s1999_s1, %s1771_s9  ;;  %p1775_p1 = scmp.lt.u32.totalorder %s1771_s9, %s1999_s1 }
   0x4   :  { %p1777_p2 = pnand %p1775_p1, %p1772_p0 }
   0x6   :  { %1780 = shalt.err (!%p1777_p2)
}
   0x7   :  { %s1781_s14 = scalar_lea.vmem %s23_s28, 16384  ;;  %p1786_p4 = scmp.lt.s32.totalorder %s23_s28, %s23_s28 }
   0x8   :  { %p1782_p3 = scmp.ne.s32.totalorder %s23_s28, %s1781_s14  ;;  %p1787_p5 = scmp.lt.s32.totalorder %s1781_s14, %s1781_s14 }
   0xa   :  { %p1788_p6 = por %p1787_p5, %p1786_p4 }
   0xc   :  { %p1789_p7 = pnand %p1788_p6, %p1782_p3 }
   0xe   :  { %1792 = shalt.err (!%p1789_p7)
}
   0xf   :  { %s1796_s15 = smov 128   ;;  %s1797_s16 = smov 8  }
  0x10   :  { %28 = dma.hbm_to_vmem [thread:$0]  %s1999_s1, 16384, %s23_s28, [#allocation3], %s1796_s15, %s1796_s15, %s1797_s16  }
  0x11   :  { %1793 = dma.done.wait [#allocation3], 16384  }
  0x12   :  { %1794 = vsyncadd [#allocation3], 4294950912  ;;  %v1555_v0 = vld [vmem:[#allocation2 + $0x104] ss:$8 sps:$4 sm:$0xff]   ;;  %v1557_v1 = vld [vmem:[#allocation2 + $0x100] ss:$8 sps:$4 sm:$0xff]  }
  0x13   :  { %890 = vmatprep.subr.bf16.mxu0 %v1555_v0  ;;  %v1558_v2 = vld [vmem:[#allocation2 + $0x114] ss:$8 sps:$4 sm:$0xff]   ;;  %v1560_v3 = vld [vmem:[#allocation2 + $0x110] ss:$8 sps:$4 sm:$0xff]   ;;  %v1561_v4 = vld [vmem:[#allocation2 + $0x124] ss:$8 sps:$4 sm:$0xff]  }
  0x14   :  { %891 = vmatpush1.bf16.msra.mxu0 %v1557_v1  ;;  %v1563_v5 = vld [vmem:[#allocation2 + $0x120] ss:$8 sps:$4 sm:$0xff]   ;;  %v1564_v6 = vld [vmem:[#allocation2 + $0x134] ss:$8 sps:$4 sm:$0xff]   ;;  %v1566_v7 = vld [vmem:[#allocation2 + $0x130] ss:$8 sps:$4 sm:$0xff]  }
  0x15   :  { %892 = vmatprep.subr.bf16.mxu0 %v1558_v2  ;;  %v1567_v8 = vld [vmem:[#allocation2 + $0x144] ss:$8 sps:$4 sm:$0xff]   ;;  %v1569_v9 = vld [vmem:[#allocation2 + $0x140] ss:$8 sps:$4 sm:$0xff]   ;;  %v1570_v10 = vld [vmem:[#allocation2 + $0x154] ss:$8 sps:$4 sm:$0xff]  }
  0x16   :  { %v1572_v11 = vld [vmem:[#allocation2 + $0x150] ss:$8 sps:$4 sm:$0xff]   ;;  %v1573_v12 = vld [vmem:[#allocation2 + $0x164] ss:$8 sps:$4 sm:$0xff]   ;;  %v1575_v16 = vld [vmem:[#allocation2 + $0x160] ss:$8 sps:$4 sm:$0xff]  }
  0x17   :  { %v46_v13 = vld [vmem:[%s1998_s0 + $0x18] sm:$0xff]  ;;  %v1579_v19 = vld [vmem:[#allocation2 + $0x184] ss:$8 sps:$4 sm:$0xff]   ;;  %v1581_v20 = vld [vmem:[#allocation2 + $0x180] ss:$8 sps:$4 sm:$0xff]   ;;  %vm1799_vm0 = vmmov 0  }
  0x18   :  { %893 = vmatpush1.bf16.msra.mxu0 %v1560_v3  ;;  %v54_v14 = vld [vmem:[%s1998_s0 + $0x58] sm:$0xff]  ;;  %v1585_v23 = vld [vmem:[#allocation2 + $0x1a4] ss:$8 sps:$4 sm:$0xff]   ;;  %v1587_v24 = vld [vmem:[#allocation2 + $0x1a0] ss:$8 sps:$4 sm:$0xff]  }
  0x19   :  { %894 = vmatprep.subr.bf16.mxu0 %v1561_v4  ;;  %v62_v15 = vpack.c.bf16 %v54_v14, %v46_v13  ;;  %v1576_v17 = vld [vmem:[#allocation2 + $0x174] ss:$8 sps:$4 sm:$0xff]   ;;  %v1578_v18 = vld [vmem:[#allocation2 + $0x170] ss:$8 sps:$4 sm:$0xff]   ;;  %v1648_v27 = vld [vmem:[#allocation2 + $0x4] ss:$8 sps:$4 sm:$0xff]  }
  0x1a   :  { %v1582_v21 = vld [vmem:[#allocation2 + $0x194] ss:$8 sps:$4 sm:$0xff]   ;;  %v1584_v22 = vld [vmem:[#allocation2 + $0x190] ss:$8 sps:$4 sm:$0xff]   ;;  %v1650_v28 = vld [vmem:[#allocation2] ss:$8 sps:$4 sm:$0xff]   ;;  %847 = vmatprep.subr.bf16.mxu1 %v1648_v27 }
  0x1b   :  { %922 = vmatprep.mubr.bf16.mxu0 %v62_v15  ;;  %v1588_v25 = vld [vmem:[#allocation2 + $0x1b4] ss:$8 sps:$4 sm:$0xff]   ;;  %v1590_v26 = vld [vmem:[#allocation2 + $0x1b0] ss:$8 sps:$4 sm:$0xff]   ;;  %v1591_v29 = vld [vmem:[#allocation2 + $0x1c4] ss:$8 sps:$4 sm:$0xff]   ;;  %848 = vmatpush1.bf16.msra.mxu1 %v1650_v28 }
  0x1c   :  { %895 = vmatpush1.bf16.msra.mxu0 %v1563_v5  ;;  %v1654_v30 = vld [vmem:[#allocation2 + $0x14] ss:$8 sps:$4 sm:$0xff]   ;;  %v1656_v31 = vld [vmem:[#allocation2 + $0x10] ss:$8 sps:$4 sm:$0xff]   ;;  %v1593_v32 = vld [vmem:[#allocation2 + $0x1c0] ss:$8 sps:$4 sm:$0xff]  }
  0x1d   :  { %896 = vmatprep.subr.bf16.mxu0 %v1564_v6  ;;  %v1594_v33 = vld [vmem:[#allocation2 + $0x1d4] ss:$8 sps:$4 sm:$0xff]   ;;  %849 = vmatprep.subr.bf16.mxu1 %v1654_v30  ;;  %v1660_v34 = vld [vmem:[#allocation2 + $0x24] ss:$8 sps:$4 sm:$0xff]   ;;  %v1662_v35 = vld [vmem:[#allocation2 + $0x20] ss:$8 sps:$4 sm:$0xff]  }
  0x1e   :  { %v1596_v36 = vld [vmem:[#allocation2 + $0x1d0] ss:$8 sps:$4 sm:$0xff]   ;;  %v1597_v37 = vld [vmem:[#allocation2 + $0x1e4] ss:$8 sps:$4 sm:$0xff]   ;;  %v1666_v38 = vld [vmem:[#allocation2 + $0x34] ss:$8 sps:$4 sm:$0xff]  }
  0x1f   :  { %850 = vmatpush1.bf16.msra.mxu1 %v1656_v31  ;;  %v1668_v39 = vld [vmem:[#allocation2 + $0x30] ss:$8 sps:$4 sm:$0xff]   ;;  %v1599_v40 = vld [vmem:[#allocation2 + $0x1e0] ss:$8 sps:$4 sm:$0xff]   ;;  %v1672_v41 = vld [vmem:[#allocation2 + $0x44] ss:$8 sps:$4 sm:$0xff]  }
  0x20   :  { %897 = vmatpush1.bf16.msra.mxu0 %v1566_v7  ;;  %851 = vmatprep.subr.bf16.mxu1 %v1660_v34  ;;  %v1600_v42 = vld [vmem:[#allocation2 + $0x1f4] ss:$8 sps:$4 sm:$0xff]   ;;  %v1602_v43 = vld [vmem:[#allocation2 + $0x1f0] ss:$8 sps:$4 sm:$0xff]   ;;  %v1605_v45 = vld [vmem:[#allocation2 + $0x204] ss:$8 sps:$4 sm:$0xff]  }
  0x21   :  { %898 = vmatprep.subr.bf16.mxu0 %v1567_v8  ;;  %v45_v44 = vld [vmem:[%s1998_s0 + $0x10] sm:$0xff]  ;;  %v1674_v47 = vld [vmem:[#allocation2 + $0x40] ss:$8 sps:$4 sm:$0xff]   ;;  %v1684_v56 = vld [vmem:[#allocation2 + $0x64] ss:$8 sps:$4 sm:$0xff]  }
  0x22   :  { %v53_v46 = vld [vmem:[%s1998_s0 + $0x50] sm:$0xff]  ;;  %v48_v48 = vld [vmem:[%s1998_s0 + $0x28] sm:$0xff]  ;;  %v51_v34 = vld [vmem:[%s1998_s0 + $0x40] sm:$0xff] }
  0x23   :  { %852 = vmatpush1.bf16.msra.mxu1 %v1662_v35  ;;  %v1678_v49 = vld [vmem:[#allocation2 + $0x54] ss:$8 sps:$4 sm:$0xff]   ;;  %v56_v50 = vld [vmem:[%s1998_s0 + $0x68] sm:$0xff]  ;;  %v61_v51 = vpack.c.bf16 %v53_v46, %v45_v44  ;;  %v1680_v52 = vld [vmem:[#allocation2 + $0x50] ss:$8 sps:$4 sm:$0xff]  }
  0x24   :  { %899 = vmatpush1.bf16.msra.mxu0 %v1569_v9  ;;  %853 = vmatprep.subr.bf16.mxu1 %v1666_v38  ;;  %v1603_v53 = vld [vmem:[#allocation2 + $0x200] ss:$8 sps:$4 sm:$0xff]   ;;  %v1608_v54 = vld [vmem:[#allocation2 + $0x214] ss:$8 sps:$4 sm:$0xff]   ;;  %v64_v55 = vpack.c.bf16 %v56_v50, %v48_v48  ;;  %v1606_v58 = vld [vmem:[#allocation2 + $0x210] ss:$8 sps:$4 sm:$0xff]  }
  0x25   :  { %900 = vmatprep.subr.bf16.mxu0 %v1570_v10  ;;  %v1686_v57 = vld [vmem:[#allocation2 + $0x60] ss:$8 sps:$4 sm:$0xff]   ;;  %v1690_v59 = vld [vmem:[#allocation2 + $0x74] ss:$8 sps:$4 sm:$0xff]   ;;  %v1611_v60 = vld [vmem:[#allocation2 + $0x224] ss:$8 sps:$4 sm:$0xff]  }
  0x26   :  { %v1692_v61 = vld [vmem:[#allocation2 + $0x70] ss:$8 sps:$4 sm:$0xff]   ;;  %v1609_v62 = vld [vmem:[#allocation2 + $0x220] ss:$8 sps:$4 sm:$0xff]   ;;  %v1696_v63 = vld [vmem:[#allocation2 + $0x84] ss:$8 sps:$4 sm:$0xff]  }
  0x27   :  { %854 = vmatpush1.bf16.msra.mxu1 %v1668_v39  ;;  %v1614_v0 = vld [vmem:[#allocation2 + $0x234] ss:$8 sps:$4 sm:$0xff]   ;;  %v1698_v1 = vld [vmem:[#allocation2 + $0x80] ss:$8 sps:$4 sm:$0xff]   ;;  %v1612_v2 = vld [vmem:[#allocation2 + $0x230] ss:$8 sps:$4 sm:$0xff]  }
  0x28   :  { %901 = vmatpush1.bf16.msra.mxu0 %v1572_v11  ;;  %855 = vmatprep.subr.bf16.mxu1 %v1672_v41  ;;  %v1702_v3 = vld [vmem:[#allocation2 + $0x94] ss:$8 sps:$4 sm:$0xff]   ;;  %v1617_v4 = vld [vmem:[#allocation2 + $0x244] ss:$8 sps:$4 sm:$0xff]   ;;  %v1704_v5 = vld [vmem:[#allocation2 + $0x90] ss:$8 sps:$4 sm:$0xff]  }
  0x29   :  { %902 = vmatprep.subr.bf16.mxu0 %v1573_v12  ;;  %v1615_v6 = vld [vmem:[#allocation2 + $0x240] ss:$8 sps:$4 sm:$0xff]   ;;  %v1708_v7 = vld [vmem:[#allocation2 + $0xa4] ss:$8 sps:$4 sm:$0xff]   ;;  %v1620_v8 = vld [vmem:[#allocation2 + $0x254] ss:$8 sps:$4 sm:$0xff]  }
  0x2a   :  { %v1710_v9 = vld [vmem:[#allocation2 + $0xa0] ss:$8 sps:$4 sm:$0xff]   ;;  %v1618_v10 = vld [vmem:[#allocation2 + $0x250] ss:$8 sps:$4 sm:$0xff]   ;;  %v1714_v11 = vld [vmem:[#allocation2 + $0xb4] ss:$8 sps:$4 sm:$0xff]  }
  0x2b   :  { %856 = vmatpush1.bf16.msra.mxu1 %v1674_v47  ;;  %v1623_v12 = vld [vmem:[#allocation2 + $0x264] ss:$8 sps:$4 sm:$0xff]   ;;  %v1716_v13 = vld [vmem:[#allocation2 + $0xb0] ss:$8 sps:$4 sm:$0xff]   ;;  %v1621_v15 = vld [vmem:[#allocation2 + $0x260] ss:$8 sps:$4 sm:$0xff]  }
  0x2c   :  { %903 = vmatpush1.bf16.msra.mxu0 %v1575_v16  ;;  %857 = vmatprep.subr.bf16.mxu1 %v1678_v49  ;;  %v44_v14 = vld [vmem:[%s1998_s0 + $0x8] sm:$0xff]  ;;  %v1632_v27 = vld [vmem:[#allocation2 + $0x294] ss:$8 sps:$4 sm:$0xff]   ;;  %v1630_v28 = vld [vmem:[#allocation2 + $0x290] ss:$8 sps:$4 sm:$0xff]  }
  0x2d   :  { %904 = vmatprep.subr.bf16.mxu0 %v1576_v17  ;;  %v1720_v16 = vld [vmem:[#allocation2 + $0xc4] ss:$8 sps:$4 sm:$0xff]   ;;  %v1734_v30 = vld [vmem:[#allocation2 + $0xe0] ss:$8 sps:$4 sm:$0xff]   ;;  %v1738_v31 = vld [vmem:[#allocation2 + $0xf4] ss:$8 sps:$4 sm:$0xff]  }
  0x2e   :  { %v52_v17 = vld [vmem:[%s1998_s0 + $0x48] sm:$0xff]  ;;  %v1748_v38 = vld [vmem:[%s2001_s3] sm:$0xff]   ;;  %v1636_v39 = vld [vmem:[#allocation2 + $0x2b0] ss:$8 sps:$4 sm:$0xff]  }
  0x2f   :  { %858 = vmatpush1.bf16.msra.mxu1 %v1680_v52  ;;  %v1633_v35 = vld [vmem:[#allocation2 + $0x2a0] ss:$8 sps:$4 sm:$0xff]   ;;  %v1644_v46 = vld [vmem:[#allocation2 + $0x2d4] ss:$8 sps:$4 sm:$0xff]   ;;  %v1642_v48 = vld [vmem:[#allocation2 + $0x2d0] ss:$8 sps:$4 sm:$0xff]  }
  0x30   :  { %905 = vmatpush1.bf16.msra.mxu0 %v1578_v18  ;;  %859 = vmatprep.subr.bf16.mxu1 %v1684_v56  ;;  %v1626_v18 = vld [vmem:[#allocation2 + $0x274] ss:$8 sps:$4 sm:$0xff]   ;;  %v1749_v41 = vld [vmem:[%s2001_s3 + $0x48] sm:$0xff]   ;;  %v55_v56 = vld [vmem:[%s1998_s0 + $0x60] sm:$0xff] }
  0x31   :  { %906 = vmatprep.subr.bf16.mxu0 %v1579_v19  ;;  %v60_v19 = vpack.c.bf16 %v52_v17, %v44_v14  ;;  %v1639_v44 = vld [vmem:[#allocation2 + $0x2c0] ss:$8 sps:$4 sm:$0xff]   ;;  %v1752_v47 = vld [vmem:[%s2001_s3 + $0x10] sm:$0xff]   ;;  %v1753_v49 = vld [vmem:[%s2001_s3 + $0x58] sm:$0xff]  }
  0x32   :  { %v1647_v50 = vld [vmem:[#allocation2 + $0x2e4] ss:$8 sps:$4 sm:$0xff]   ;;  %v1645_v52 = vld [vmem:[#allocation2 + $0x2e0] ss:$8 sps:$4 sm:$0xff]  }
  0x33   :  { %860 = vmatpush1.bf16.msra.mxu1 %v1686_v57  ;;  %879 = vmatprep.mubr.bf16.mxu1 %v60_v19  ;;  %v1659_v57 = vld [vmem:[#allocation2 + $0x304] ss:$8 sps:$4 sm:$0xff]   ;;  %v1705_v14 = vld [vmem:[#allocation2 + $0x380] ss:$8 sps:$4 sm:$0xff]   ;;  %v1725_v19 = vld [vmem:[#allocation2 + $0x3b4] ss:$8 sps:$4 sm:$0xff]  }
  0x34   :  { %907 = vmatpush1.bf16.msra.mxu0 %v1581_v20  ;;  %861 = vmatprep.subr.bf16.mxu1 %v1690_v59  ;;  %v1624_v20 = vld [vmem:[#allocation2 + $0x270] ss:$8 sps:$4 sm:$0xff]   ;;  %v1719_v17 = vld [vmem:[#allocation2 + $0x3a4] ss:$8 sps:$4 sm:$0xff]  }
  0x35   :  { %908 = vmatprep.subr.bf16.mxu0 %v1582_v21  ;;  %v1722_v21 = vld [vmem:[#allocation2 + $0xc0] ss:$8 sps:$4 sm:$0xff]   ;;  %v58_v59 = vld [vmem:[%s1998_s0 + $0x78] sm:$0xff] }
  0x37   :  { %862 = vmatpush1.bf16.msra.mxu1 %v1692_v61  ;;  %v1657_v61 = vld [vmem:[#allocation2 + $0x300] ss:$8 sps:$4 sm:$0xff]  }
  0x38   :  { %909 = vmatpush1.bf16.msra.mxu0 %v1584_v22  ;;  %863 = vmatprep.subr.bf16.mxu1 %v1696_v63  ;;  %v1726_v22 = vld [vmem:[#allocation2 + $0xd4] ss:$8 sps:$4 sm:$0xff]  }
  0x39   :  { %910 = vmatprep.subr.bf16.mxu0 %v1585_v23  ;;  %v1629_v23 = vld [vmem:[#allocation2 + $0x284] ss:$8 sps:$4 sm:$0xff]   ;;  %v1665_v63 = vld [vmem:[#allocation2 + $0x314] ss:$8 sps:$4 sm:$0xff]  }
  0x3b   :  { %864 = vmatpush1.bf16.msra.mxu1 %v1698_v1  ;;  %v1671_v1 = vld [vmem:[#allocation2 + $0x324] ss:$8 sps:$4 sm:$0xff]  }
  0x3c   :  { %911 = vmatpush1.bf16.msra.mxu0 %v1587_v24  ;;  %865 = vmatprep.subr.bf16.mxu1 %v1702_v3  ;;  %v1627_v24 = vld [vmem:[#allocation2 + $0x280] ss:$8 sps:$4 sm:$0xff]   ;;  %v1677_v3 = vld [vmem:[#allocation2 + $0x334] ss:$8 sps:$4 sm:$0xff]  }
  0x3d   :  { %912 = vmatprep.subr.bf16.mxu0 %v1588_v25  ;;  %v1728_v25 = vld [vmem:[#allocation2 + $0xd0] ss:$8 sps:$4 sm:$0xff]  }
  0x3f   :  { %866 = vmatpush1.bf16.msra.mxu1 %v1704_v5  ;;  %v1683_v5 = vld [vmem:[#allocation2 + $0x344] ss:$8 sps:$4 sm:$0xff]  }
  0x40   :  { %913 = vmatpush1.bf16.msra.mxu0 %v1590_v26  ;;  %867 = vmatprep.subr.bf16.mxu1 %v1708_v7  ;;  %v1732_v26 = vld [vmem:[#allocation2 + $0xe4] ss:$8 sps:$4 sm:$0xff]   ;;  %v1689_v7 = vld [vmem:[#allocation2 + $0x354] ss:$8 sps:$4 sm:$0xff]  }
  0x41   :  { %914 = vmatprep.subr.bf16.mxu0 %v1591_v29  ;;  %v1635_v29 = vld [vmem:[#allocation2 + $0x2a4] ss:$8 sps:$4 sm:$0xff]  }
  0x43   :  { %868 = vmatpush1.bf16.msra.mxu1 %v1710_v9  ;;  %v1695_v9 = vld [vmem:[#allocation2 + $0x364] ss:$8 sps:$4 sm:$0xff]  }
  0x44   :  { %915 = vmatpush1.bf16.msra.mxu0 %v1593_v32  ;;  %869 = vmatprep.subr.bf16.mxu1 %v1714_v11  ;;  %v1740_v32 = vld [vmem:[#allocation2 + $0xf0] ss:$8 sps:$4 sm:$0xff]   ;;  %v1701_v11 = vld [vmem:[#allocation2 + $0x374] ss:$8 sps:$4 sm:$0xff]  }
  0x45   :  { %916 = vmatprep.subr.bf16.mxu0 %v1594_v33  ;;  %v43_v33 = vld [vmem:[%s1998_s0] sm:$0xff] }
  0x47   :  { %870 = vmatpush1.bf16.msra.mxu1 %v1716_v13  ;;  %v1707_v13 = vld [vmem:[#allocation2 + $0x384] ss:$8 sps:$4 sm:$0xff]  }
  0x48   :  { %917 = vmatpush1.bf16.msra.mxu0 %v1596_v36  ;;  %871 = vmatprep.subr.bf16.mxu1 %v1720_v16  ;;  %v1747_v36 = vld [vmem:[%s2001_s3 + $0x40] sm:$0xff]   ;;  %v1711_v16 = vld [vmem:[#allocation2 + $0x390] ss:$8 sps:$4 sm:$0xff]  }
  0x49   :  { %918 = vmatprep.subr.bf16.mxu0 %v1597_v37  ;;  %v1638_v37 = vld [vmem:[#allocation2 + $0x2b4] ss:$8 sps:$4 sm:$0xff]  }
  0x4b   :  { %872 = vmatpush1.bf16.msra.mxu1 %v1722_v21  ;;  %v1731_v21 = vld [vmem:[#allocation2 + $0x3c4] ss:$8 sps:$4 sm:$0xff]  }
  0x4c   :  { %919 = vmatpush1.bf16.msra.mxu0 %v1599_v40  ;;  %873 = vmatprep.subr.bf16.mxu1 %v1726_v22  ;;  %v59_v40 = vpack.c.bf16 %v51_v34, %v43_v33  ;;  %v1729_v22 = vld [vmem:[#allocation2 + $0x3c0] ss:$8 sps:$4 sm:$0xff]  }
  0x4d   :  { %920 = vmatprep.subr.bf16.mxu0 %v1600_v42  ;;  %v1641_v42 = vld [vmem:[#allocation2 + $0x2c4] ss:$8 sps:$4 sm:$0xff]  }
  0x4e   :  { %v1756_v33 = vld [vmem:[%s2001_s3 + $0x20] sm:$0xff]   ;;  %v1757_v34 = vld [vmem:[%s2001_s3 + $0x68] sm:$0xff]  }
  0x4f   :  { %874 = vmatpush1.bf16.msra.mxu1 %v1728_v25  ;;  %v1743_v25 = vld [vmem:[#allocation2 + $0x3e4] ss:$8 sps:$4 sm:$0xff]  }
  0x50   :  { %921 = vmatpush1.bf16.msra.mxu0 %v1602_v43  ;;  %875 = vmatprep.subr.bf16.mxu1 %v1732_v26  ;;  %v1750_v43 = vld [vmem:[%s2001_s3 + $0x8] sm:$0xff]  }
  0x51   :  { %933 = vmatprep.subr.bf16.mxu0 %v1605_v45  ;;  %v1751_v45 = vld [vmem:[%s2001_s3 + $0x50] sm:$0xff]   ;;  %v1741_v26 = vld [vmem:[#allocation2 + $0x3e0] ss:$8 sps:$4 sm:$0xff]  }
  0x53   :  { %923 = vmatmul.mubr.bf16.vlgmr.msra.gmra.mrb[0].mxu0 %v61_v51  ;;  %876 = vmatpush1.bf16.msra.mxu1 %v1734_v30  ;;  %v1754_v51 = vld [vmem:[%s2001_s3 + $0x18] sm:$0xff]   ;;  %v57_v30 = vld [vmem:[%s1998_s0 + $0x70] sm:$0xff] }
  0x54   :  { %934 = vmatpush1.bf16.msra.mxu0 %v1603_v53  ;;  %965 = vmatprep.mubr.bf16.mxu0 %v64_v55  ;;  %v1653_v53 = vld [vmem:[#allocation2 + $0x2f4] ss:$8 sps:$4 sm:$0xff]   ;;  %v47_v55 = vld [vmem:[%s1998_s0 + $0x20] sm:$0xff] }
  0x55   :  { %935 = vmatprep.subr.bf16.mxu0 %v1608_v54  ;;  %877 = vmatprep.subr.bf16.mxu1 %v1738_v31  ;;  %v1651_v54 = vld [vmem:[#allocation2 + $0x2f0] ss:$8 sps:$4 sm:$0xff]  }
  0x57   :  { %878 = vmatpush1.bf16.msra.mxu1 %v1740_v32  ;;  %v1755_v32 = vld [vmem:[%s2001_s3 + $0x60] sm:$0xff]  }
  0x58   :  { %936 = vmatpush1.bf16.msra.mxu0 %v1606_v58  ;;  %1483 = vmatprep.subr.bf16.mxu1 %v1747_v36  ;;  %v50_v58 = vld [vmem:[%s1998_s0 + $0x38] sm:$0xff]  ;;  %v1759_v36 = vld [vmem:[%s2001_s3 + $0x70] sm:$0xff]  }
  0x59   :  { %937 = vmatprep.subr.bf16.mxu0 %v1611_v60  ;;  %v63_v60 = vpack.c.bf16 %v55_v56, %v47_v55 }
  0x5a   :  { %880 = vmatmul.mubr.bf16.vlgmr.msra.gmra.mrb[0].mxu1 %v59_v40  ;;  %v1798_v40 = vmov 0.0  }
  0x5b   :  { %1484 = vmatpush3.bf16.msra.mxu1 %v1748_v38  ;;  %v1761_v38 = vld [vmem:[%s2001_s3 + $0x78] sm:$0xff]  }
  0x5c   :  { %938 = vmatpush1.bf16.msra.mxu0 %v1609_v62  ;;  %1485 = vmatprep.subr.bf16.mxu1 %v1749_v41  ;;  %v66_v62 = vpack.c.bf16 %v58_v59, %v50_v58 }
  0x5d   :  { %939 = vmatprep.subr.bf16.mxu0 %v1614_v0  ;;  %v1663_v0 = vld [vmem:[#allocation2 + $0x310] ss:$8 sps:$4 sm:$0xff]  }
  0x5f   :  { %1486 = vmatpush3.bf16.msra.mxu1 %v1750_v43 }
  0x60   :  { %940 = vmatpush1.bf16.msra.mxu0 %v1612_v2  ;;  %1487 = vmatprep.subr.bf16.mxu1 %v1751_v45  ;;  %v1669_v2 = vld [vmem:[#allocation2 + $0x320] ss:$8 sps:$4 sm:$0xff]   ;;  %v197_v45 = vlaneseq }
  0x61   :  { %941 = vmatprep.subr.bf16.mxu0 %v1617_v4  ;;  %v1675_v4 = vld [vmem:[#allocation2 + $0x330] ss:$8 sps:$4 sm:$0xff]  }
  0x63   :  { %1488 = vmatpush3.bf16.msra.mxu1 %v1752_v47 }
  0x64   :  { %942 = vmatpush1.bf16.msra.mxu0 %v1615_v6  ;;  %1489 = vmatprep.subr.bf16.mxu1 %v1753_v49  ;;  %v1681_v6 = vld [vmem:[#allocation2 + $0x340] ss:$8 sps:$4 sm:$0xff]  }
  0x65   :  { %943 = vmatprep.subr.bf16.mxu0 %v1620_v8  ;;  %v1687_v8 = vld [vmem:[#allocation2 + $0x350] ss:$8 sps:$4 sm:$0xff]  }
  0x67   :  { %1490 = vmatpush3.bf16.msra.mxu1 %v1754_v51 }
  0x68   :  { %944 = vmatpush1.bf16.msra.mxu0 %v1618_v10  ;;  %v1693_v10 = vld [vmem:[#allocation2 + $0x360] ss:$8 sps:$4 sm:$0xff]   ;;  %1491 = vmatprep.subr.bf16.mxu1 %v1755_v32 }
  0x69   :  { %945 = vmatprep.subr.bf16.mxu0 %v1623_v12  ;;  %v1699_v12 = vld [vmem:[#allocation2 + $0x370] ss:$8 sps:$4 sm:$0xff]  }
  0x6b   :  { %1492 = vmatpush3.bf16.msra.mxu1 %v1756_v33 }
  0x6c   :  { %946 = vmatpush1.bf16.msra.mxu0 %v1621_v15  ;;  %v1713_v15 = vld [vmem:[#allocation2 + $0x394] ss:$8 sps:$4 sm:$0xff]   ;;  %1493 = vmatprep.subr.bf16.mxu1 %v1757_v34 }
  0x6d   :  { %947 = vmatprep.subr.bf16.mxu0 %v1626_v18  ;;  %v1717_v18 = vld [vmem:[#allocation2 + $0x3a0] ss:$8 sps:$4 sm:$0xff]  }
  0x70   :  { %948 = vmatpush1.bf16.msra.mxu0 %v1624_v20  ;;  %v1723_v20 = vld [vmem:[#allocation2 + $0x3b0] ss:$8 sps:$4 sm:$0xff]  }
  0x71   :  { %949 = vmatprep.subr.bf16.mxu0 %v1629_v23  ;;  %v1737_v23 = vld [vmem:[#allocation2 + $0x3d4] ss:$8 sps:$4 sm:$0xff]  }
  0x74   :  { %950 = vmatpush1.bf16.msra.mxu0 %v1627_v24  ;;  %v1735_v24 = vld [vmem:[#allocation2 + $0x3d0] ss:$8 sps:$4 sm:$0xff]  }
  0x75   :  { %951 = vmatprep.subr.bf16.mxu0 %v1632_v27  ;;  %v1746_v27 = vld [vmem:[#allocation2 + $0x3f4] ss:$8 sps:$4 sm:$0xff]  }
  0x78   :  { %952 = vmatpush1.bf16.msra.mxu0 %v1630_v28  ;;  %v1744_v28 = vld [vmem:[#allocation2 + $0x3f0] ss:$8 sps:$4 sm:$0xff]  }
  0x79   :  { %953 = vmatprep.subr.bf16.mxu0 %v1635_v29  ;;  %v49_v29 = vld [vmem:[%s1998_s0 + $0x30] sm:$0xff] }
  0x7a   :  { %v65_v31 = vpack.c.bf16 %v57_v30, %v49_v29 }
  0x7c   :  { %954 = vmatpush1.bf16.msra.mxu0 %v1633_v35  ;;  %v1758_v35 = vld [vmem:[%s2001_s3 + $0x28] sm:$0xff]  }
  0x7d   :  { %955 = vmatprep.subr.bf16.mxu0 %v1638_v37  ;;  %1494 = vmatpush3.bf16.msra.mxu1 %v1758_v35  ;;  %v1760_v37 = vld [vmem:[%s2001_s3 + $0x30] sm:$0xff]  }
  0x7e   :  { %1495 = vmatprep.subr.bf16.mxu1 %v1759_v36 }
  0x80   :  { %956 = vmatpush1.bf16.msra.mxu0 %v1636_v39  ;;  %v1762_v39 = vld [vmem:[%s2001_s3 + $0x38] sm:$0xff]  }
  0x81   :  { %957 = vmatprep.subr.bf16.mxu0 %v1641_v42  ;;  %1496 = vmatpush3.bf16.msra.mxu1 %v1760_v37 }
  0x82   :  { %1497 = vmatprep.subr.bf16.mxu1 %v1761_v38 }
  0x84   :  { %958 = vmatpush1.bf16.msra.mxu0 %v1639_v44 }
  0x85   :  { %959 = vmatprep.subr.bf16.mxu0 %v1644_v46  ;;  %1498 = vmatpush3.bf16.msra.mxu1 %v1762_v39  ;;  %v198_v46 = vshrl.u32 %v197_v45, 7 }
  0x86   :  { %1514 = vmatprep.subr.bf16.mxu1 %v1798_v40 }
  0x87   :  { %v199_v47 = vsub.s32 0, %v198_v46  ;;  %v203_v49 = vsub.s32 1, %v198_v46 }
  0x88   :  { %960 = vmatpush1.bf16.msra.mxu0 %v1642_v48  ;;  %v195_v48 = vld [vmem:[%s2000_s2] sm:$0x3] }
  0x89   :  { %961 = vmatprep.subr.bf16.mxu0 %v1647_v50  ;;  %v200_v50 = vrot.slane %v195_v48, %v199_v47  ;;  %v204_v51 = vrot.slane %v195_v48, %v203_v49 }
  0x8c   :  { %962 = vmatpush1.bf16.msra.mxu0 %v1645_v52 }
  0x8d   :  { %963 = vmatprep.subr.bf16.mxu0 %v1653_v53 }
  0x90   :  { %964 = vmatpush1.bf16.msra.mxu0 %v1651_v54 }
  0x91   :  { %976 = vmatprep.subr.bf16.mxu0 %v1659_v57 }
  0x93   :  { %966 = vmatmul.mubr.bf16.vlgmr.msra.gmra.mrb[0].mxu0 %v63_v60 }
  0x94   :  { %977 = vmatpush1.bf16.msra.mxu0 %v1657_v61  ;;  %1008 = vmatprep.mubr.bf16.mxu0 %v66_v62 }
  0x95   :  { %978 = vmatprep.subr.bf16.mxu0 %v1665_v63 }
  0x98   :  { %979 = vmatpush1.bf16.msra.mxu0 %v1663_v0 }
  0x99   :  { %980 = vmatprep.subr.bf16.mxu0 %v1671_v1 }
  0x9c   :  { %981 = vmatpush1.bf16.msra.mxu0 %v1669_v2 }
  0x9d   :  { %982 = vmatprep.subr.bf16.mxu0 %v1677_v3 }
  0xa0   :  { %983 = vmatpush1.bf16.msra.mxu0 %v1675_v4 }
  0xa1   :  { %984 = vmatprep.subr.bf16.mxu0 %v1683_v5 }
  0xa4   :  { %985 = vmatpush1.bf16.msra.mxu0 %v1681_v6  ;;  %v1763_v6 = vld [vmem:[%s2003_s5] sm:$0xff]  }
  0xa5   :  { %986 = vmatprep.subr.bf16.mxu0 %v1689_v7  ;;  %v1764_v7 = vld [vmem:[%s2003_s5 + $0x8] sm:$0xff]  }
  0xa8   :  { %987 = vmatpush1.bf16.msra.mxu0 %v1687_v8  ;;  %v1765_v8 = vld [vmem:[%s2003_s5 + $0x10] sm:$0xff]  }
  0xa9   :  { %988 = vmatprep.subr.bf16.mxu0 %v1695_v9  ;;  %v1766_v9 = vld [vmem:[%s2003_s5 + $0x18] sm:$0xff]  }
  0xac   :  { %989 = vmatpush1.bf16.msra.mxu0 %v1693_v10  ;;  %v1767_v10 = vld [vmem:[%s2003_s5 + $0x20] sm:$0xff]  }
  0xad   :  { %990 = vmatprep.subr.bf16.mxu0 %v1701_v11  ;;  %v1768_v11 = vld [vmem:[%s2003_s5 + $0x28] sm:$0xff]  }
  0xb0   :  { %991 = vmatpush1.bf16.msra.mxu0 %v1699_v12  ;;  %v1769_v12 = vld [vmem:[%s2003_s5 + $0x30] sm:$0xff]  }
  0xb1   :  { %992 = vmatprep.subr.bf16.mxu0 %v1707_v13  ;;  %v1770_v13 = vld [vmem:[%s2003_s5 + $0x38] sm:$0xff]  }
  0xb4   :  { %993 = vmatpush1.bf16.msra.mxu0 %v1705_v14 }
  0xb5   :  { %994 = vmatprep.subr.bf16.mxu0 %v1713_v15  ;;  %v1457_v15 = vld [vmem:[%s2002_s4] ss:$0 sm:$0xff] }
  0xb8   :  { %995 = vmatpush1.bf16.msra.mxu0 %v1711_v16 }
  0xb9   :  { %996 = vmatprep.subr.bf16.mxu0 %v1719_v17 }
  0xbc   :  { %997 = vmatpush1.bf16.msra.mxu0 %v1717_v18 }
  0xbd   :  { %998 = vmatprep.subr.bf16.mxu0 %v1725_v19 }
  0xc0   :  { %999 = vmatpush1.bf16.msra.mxu0 %v1723_v20 }
  0xc1   :  { %1000 = vmatprep.subr.bf16.mxu0 %v1731_v21 }
  0xc4   :  { %1001 = vmatpush1.bf16.msra.mxu0 %v1729_v22 }
  0xc5   :  { %1002 = vmatprep.subr.bf16.mxu0 %v1737_v23 }
  0xc8   :  { %1003 = vmatpush1.bf16.msra.mxu0 %v1735_v24 }
  0xc9   :  { %1004 = vmatprep.subr.bf16.mxu0 %v1743_v25 }
  0xcc   :  { %1005 = vmatpush1.bf16.msra.mxu0 %v1741_v26  ;;  %v1474_v26 = vld [vmem:[%s2004_s6] ss:$0 sm:$0xff] }
  0xcd   :  { %1006 = vmatprep.subr.bf16.mxu0 %v1746_v27 }
  0xd0   :  { %1007 = vmatpush1.bf16.msra.mxu0 %v1744_v28 }
  0xd3   :  { %1009 = vmatmul.mubr.bf16.vlgmr.msra.gmra.mrb[0].mxu0 %v65_v31 }
 0x12d   :  { %v881_v41 = vpop.f32.mrb[0].mxu1 }
 0x12e   :  { %v883_v42 = vpop.f32.mrb[1].mxu1  ;;  %v882_v52 = vadd.f32 %v881_v41, %v200_v50 }
 0x12f   :  { %v885_v43 = vpop.f32.mrb[2].mxu1  ;;  %v884_v53 = vadd.f32 %v883_v42, %v204_v51 }
 0x130   :  { %v887_v44 = vpop.f32.mrb[3].mxu1  ;;  %v886_v55 = vadd.f32 %v885_v43, %v200_v50 }
 0x131   :  { %v888_v58 = vadd.f32 %v887_v44, %v204_v51 }
 0x1a6   :  { %v1010_v54 = vpop.f32.mrb[0].mxu0 }
 0x1a7   :  { %v1535_v56 = vadd.f32 %v1010_v54, %v882_v52  ;;  %v1012_v57 = vpop.f32.mrb[1].mxu0 }
 0x1a8   :  { %v1537_v59 = vadd.f32 %v1012_v57, %v884_v53  ;;  %v1014_v60 = vpop.f32.mrb[2].mxu0 }
 0x1a9   :  { %v1539_v61 = vadd.f32 %v1014_v60, %v886_v55  ;;  %v1016_v62 = vpop.f32.mrb[3].mxu0  ;;  %v1019_v0 = vmax.f32 %v1535_v56, 0.0 }
 0x1aa   :  { %v1541_v63 = vadd.f32 %v1016_v62, %v888_v58  ;;  %v1020_v2 = vmax.f32 %v1537_v59, 0.0 }
 0x1ab   :  { %v1021_v1 = vmax.f32 %v1539_v61, 0.0 }
 0x1ac   :  { %v1022_v3 = vmax.f32 %v1541_v63, 0.0 }
 0x1ad   :  { %v1023_v4 = vpack.c.bf16 %v1021_v1, %v1019_v0 }
 0x1ae   :  { %v1024_v5 = vpack.c.bf16 %v1022_v3, %v1020_v2 }
 0x1b0   :  { %1192 = vmatprep.mubr.bf16.mxu1 %v1024_v5 }
 0x1b1   :  { %1193 = vmatmul.mubr.bf16.vlgmr.msra.gmra.mrb[4].mxu1 %v1023_v4 }
 0x1b2   :  { %1515 = vmatpush3.bf16.msra.mxu1 %v1763_v6  ;;  %1530 = vmatprep.mubr.msk.bf16.mxu1 %vm1799_vm0, %v1798_v40 }
 0x1b3   :  { %1516 = vmatprep.subr.bf16.mxu1 %v1798_v40 }
 0x1b6   :  { %1517 = vmatpush3.bf16.msra.mxu1 %v1764_v7 }
 0x1b7   :  { %1518 = vmatprep.subr.bf16.mxu1 %v1798_v40 }
 0x1ba   :  { %1519 = vmatpush3.bf16.msra.mxu1 %v1765_v8 }
 0x1bb   :  { %1520 = vmatprep.subr.bf16.mxu1 %v1798_v40 }
 0x1be   :  { %1521 = vmatpush3.bf16.msra.mxu1 %v1766_v9 }
 0x1bf   :  { %1522 = vmatprep.subr.bf16.mxu1 %v1798_v40 }
 0x1c2   :  { %1523 = vmatpush3.bf16.msra.mxu1 %v1767_v10 }
 0x1c3   :  { %1524 = vmatprep.subr.bf16.mxu1 %v1798_v40 }
 0x1c6   :  { %1525 = vmatpush3.bf16.msra.mxu1 %v1768_v11 }
 0x1c7   :  { %1526 = vmatprep.subr.bf16.mxu1 %v1798_v40 }
 0x1ca   :  { %1527 = vmatpush3.bf16.msra.mxu1 %v1769_v12 }
 0x1cb   :  { %1528 = vmatprep.subr.bf16.mxu1 %v1798_v40 }
 0x1ce   :  { %1529 = vmatpush3.bf16.msra.mxu1 %v1770_v13 }
 0x284   :  { %v1499_v14 = vpop.f32.mrb[4].mxu1 }
 0x285   :  { %v1500_v16 = vpop.f32.mrb[5].mxu1 }
 0x286   :  { %v1501_v17 = vadd.f32 %v1500_v16, %v1499_v14  ;;  %v1502_v18 = vpop.f32.mrb[6].mxu1 }
 0x287   :  { %v1503_v19 = vpop.f32.mrb[7].mxu1 }
 0x288   :  { %v1195_v20 = vadd.f32 %v1501_v17, %v1457_v15  ;;  %v1504_v21 = vadd.f32 %v1503_v19, %v1502_v18 }
 0x28a   :  { %v1201_v22 = vmax.f32 %v1195_v20, 0.0  ;;  %v1198_v23 = vadd.f32 %v1504_v21, %v1457_v15 }
 0x28c   :  { %1203 = vst [vmem:[%s2006_s8] sm:$0xff] %v1201_v22  ;;  %v1202_v24 = vmax.f32 %v1198_v23, 0.0 }
 0x28e   :  { %1204 = vst [vmem:[%s2006_s8 + $0x8] sm:$0xff] %v1202_v24  ;;  %v1205_v25 = vpack.c.bf16 %v1202_v24, %v1201_v22 }
 0x290   :  { %1531 = vmatmul.mubr.bf16.vlgmr.msra.gmra.mrb[8].mxu1 %v1205_v25 }
 0x363   :  { %v1311_v27 = vpop.f32.mrb[8].mxu1 }
 0x364   :  { %v1312_v28 = vadd.f32 %v1474_v26, %v1311_v27  ;;  %v1532_v29 = vpop.f32.mrb[9].mxu1 }
 0x365   :  { %v1314_v30 = vpop.f32.mrb[10].mxu1 }
 0x366   :  { %1318 = vst [vmem:[%s2005_s7] sm:$0xff] %v1312_v28  ;;  %v1315_v31 = vadd.f32 %v1474_v26, %v1314_v30  ;;  %v1533_v32 = vpop.f32.mrb[11].mxu1 }
 0x368   :  { %1319 = vst [vmem:[%s2005_s7 + $0x8] sm:$0xff] %v1315_v31 }
 0x369   :  { %1328 = vsyncpa [#allocation3], 1 }

</bundles_post_ra>
